<compile_context>
chip_gen: v5e
topology: v5e:2x2
jax: 0.10.0
libtpu: 0.0.40
codegen_flags: <defaults>
</compile_context>

<pallas_src>
import functools

import jax
import jax.numpy as jnp
from jax import lax
from jax.experimental import pallas as pl
from jax.experimental.pallas import tpu as pltpu


_LANE = 128
# K-tile cap: two double-buffered (Mp, tk) f32 tiles at Mp=128, tk=512 is
# ~0.5 MiB, far inside the 32 MiB scoped-VMEM default (and v7x's 64 MiB
# physical VMEM), while still amortizing the ~0.35 us per-grid-step overhead.
_MAX_TK = 512


def _round_up(x, m):
    return (x + m - 1) // m * m


def _pad_features(x):
    """(b,h,w,f) -> zero-padded (Mp, Kp) features in the input's native dtype."""
    b, h, w, f = x.shape
    m, k = b * h, w * f
    mp = _round_up(m, _LANE)                    # lane-dense (Mp, Mp) gram
    tk = min(_MAX_TK, _round_up(k, _LANE))      # K tile, multiple of 128
    kp = _round_up(k, tk)                       # pad K so the grid divides evenly
    feats = x.reshape(m, k)                     # keep native dtype (bf16 stays bf16)
    if (mp, kp) != (m, k):
        feats = jnp.pad(feats, ((0, mp - m), (0, kp - k)))
    denom = float(b * h * w * f)
    return feats, m, mp, kp, tk, denom


# ---------------------------------------------------------------------------
# Kernels
# ---------------------------------------------------------------------------
def _gram_kernel(feat_ref, g_ref, *, inv_denom):
    """Accumulate G = feats @ feats.T over the K grid directly into g_ref."""
    k = pl.program_id(0)

    @pl.when(k == 0)
    def _init():
        g_ref[...] = jnp.zeros_like(g_ref)

    feats = feat_ref[...]
    # feats @ feats.T without an explicit transpose: contract dim 1 of both.
    g_ref[...] += lax.dot_general(
        feats, feats,
        dimension_numbers=(((1,), (1,)), ((), ())),
        preferred_element_type=jnp.float32,
    )

    @pl.when(k == pl.num_programs(0) - 1)
    def _finalize():
        g_ref[...] = g_ref[...] * inv_denom


def _gram_mse_kernel(feat_ref, target_ref, loss_ref, acc_ref, *, inv_denom, inv_mm):
    """Loss-only path: accumulate gram in VMEM scratch, fold MSE into epilogue."""
    k = pl.program_id(0)

    @pl.when(k == 0)
    def _init():
        acc_ref[...] = jnp.zeros_like(acc_ref)

    feats = feat_ref[...]
    acc_ref[...] += lax.dot_general(
        feats, feats,
        dimension_numbers=(((1,), (1,)), ((), ())),
        preferred_element_type=jnp.float32,
    )

    @pl.when(k == pl.num_programs(0) - 1)
    def _finalize():
        diff = acc_ref[...] * inv_denom - target_ref[...]
        # Padded rows/cols are exactly zero in both operands, so the sum over
        # the padded (Mp, Mp) block equals the sum over the valid (M, M) block;
        # divide by M*M (not Mp*Mp) to get the true mean.
        loss_ref[...] = jnp.sum(diff * diff, keepdims=True) * inv_mm


# ---------------------------------------------------------------------------
# Wrappers
# ---------------------------------------------------------------------------
@jax.jit
def gram_matrix_padded(x):
    """Returns the (Mp, Mp) zero-padded gram; the valid gram is [:M, :M]."""
    feats, m, mp, kp, tk, denom = _pad_features(x)
    grid = (kp // tk,)
    kernel = functools.partial(_gram_kernel, inv_denom=1.0 / denom)
    g = pl.pallas_call(
        kernel,
        out_shape=jax.ShapeDtypeStruct((mp, mp), jnp.float32),
        grid_spec=pltpu.PrefetchScalarGridSpec(
            num_scalar_prefetch=0,
            grid=grid,
            in_specs=[pl.BlockSpec((mp, tk), lambda kk: (0, kk))],
            out_specs=pl.BlockSpec((mp, mp), lambda kk: (0, 0)),
        ),
        compiler_params=pltpu.CompilerParams(
            dimension_semantics=("arbitrary",)),
        cost_estimate=pl.CostEstimate(
            flops=2 * mp * mp * kp,
            transcendentals=0,
            bytes_accessed=mp * kp * feats.dtype.itemsize + mp * mp * 4),
    )(feats)
    return g


@jax.jit
def style_mse_loss(x, target_padded):
    """mse(gram(x), target) with no (M,M) gram written back to HBM."""
    feats, m, mp, kp, tk, denom = _pad_features(x)
    assert target_padded.shape == (mp, mp), "target was built for a different shape"
    grid = (kp // tk,)
    kernel = functools.partial(
        _gram_mse_kernel, inv_denom=1.0 / denom, inv_mm=1.0 / float(m * m))
    loss = pl.pallas_call(
        kernel,
        out_shape=jax.ShapeDtypeStruct((1, 1), jnp.float32),
        grid_spec=pltpu.PrefetchScalarGridSpec(
            num_scalar_prefetch=0,
            grid=grid,
            in_specs=[
                pl.BlockSpec((mp, tk), lambda kk: (0, kk)),
                pl.BlockSpec((mp, mp), lambda kk: (0, 0)),   # resident; fetched once
            ],
            out_specs=pl.BlockSpec((1, 1), lambda kk: (0, 0)),
            scratch_shapes=[pltpu.VMEM((mp, mp), jnp.float32)],
        ),
        compiler_params=pltpu.CompilerParams(
            dimension_semantics=("arbitrary",)),
        cost_estimate=pl.CostEstimate(
            flops=2 * mp * mp * kp + 3 * mp * mp,
            transcendentals=0,
            bytes_accessed=mp * kp * feats.dtype.itemsize + mp * mp * 4 + 4),
    )(feats, target_padded.astype(jnp.float32))
    return loss[0, 0]


class StyleLoss:
    """JAX/Pallas equivalent of the PyTorch StyleLoss module.

    __call__(x) returns x unchanged and stores mse(gram(x), gram(target)) in
    self.loss, mirroring the PyTorch module's stateful behaviour.
    """

    def __init__(self, target_feature):
        b, h, _, _ = target_feature.shape
        m = b * h
        g_padded = gram_matrix_padded(target_feature)
        self._target_padded = g_padded          # padded form for the hot path
        self.target = g_padded[:m, :m]          # matches PyTorch `.target`
        # F.mse_loss(self.target, self.target) == 0
        self.loss = jnp.float32(0.0)

    def __call__(self, x):
        # TODO(synk): stateful .loss mirrors the PyTorch module but is not
        # functionally pure; don't trace through __call__ itself under jit
        # (the pallas calls inside are already jitted).
        self.loss = style_mse_loss(x, self._target_padded)
        return x


def _gram_ref(x):
    b, h, w, f = x.shape
    feats = x.reshape(b * h, w * f).astype(jnp.float32)
    g = lax.dot_general(
        feats, feats,
        dimension_numbers=(((1,), (1,)), ((), ())),
        precision=lax.Precision.HIGHEST,
        preferred_element_type=jnp.float32,
    )
    return g / float(b * h * w * f)


if __name__ == "__main__":
    key = jax.random.PRNGKey(0)
    k_t, k_x = jax.random.split(key)

    shape = (2, 4, 16, 16)  # (batch, h, w, f_map_num)
    target_feature = jax.random.normal(k_t, shape, dtype=jnp.float32)
    x = jax.random.normal(k_x, shape, dtype=jnp.float32)

    module = StyleLoss(target_feature)
    out = module(x)
    out = jax.block_until_ready(out)
    loss = jax.block_until_ready(module.loss)

    # sanity check against a pure-JAX reference
    g_ref = _gram_ref(x)
    t_ref = _gram_ref(target_feature)
    loss_ref = jnp.mean((g_ref - t_ref) ** 2)
    assert jnp.allclose(module.target, t_ref, atol=1e-5, rtol=1e-4)
    assert jnp.allclose(loss, loss_ref, atol=1e-6, rtol=1e-3)
    assert out.shape == x.shape and jnp.allclose(out, x)

    print("KERNEL_OK")
</pallas_src>

<mosaic_0001>
module attributes {stable_mosaic.version = 11 : i64} {
  func.func @_gram_kernel(%arg0: i32, %arg1: memref<128x256xf32, #tpu.memory_space<vmem>>, %arg2: memref<128x128xf32, #tpu.memory_space<vmem>>) attributes {dimension_semantics = [#tpu.dimension_semantics<arbitrary>], iteration_bounds = array<i64: 1>, scalar_prefetch = 0 : i64, scratch_operands = 0 : i64, tpu.core_type = #tpu.core_type<tc>, window_params = [{transform_indices = @transform_0, window_bounds = array<i64: 128, 256>}, {pipeline_mode = #tpu.pipeline_mode<synchronous>, transform_indices = @transform_1, window_bounds = array<i64: 128, 128>}]} {
    %c0_i32 = arith.constant 0 : i32
    %0 = arith.cmpi eq, %arg0, %c0_i32 : i32
    %1 = arith.extui %0 : i1 to i32
    %c0_i32_0 = arith.constant 0 : i32
    %2 = arith.cmpi ne, %1, %c0_i32_0 : i32
    scf.if %2 {
      %cst_8 = arith.constant 0.000000e+00 : f32
      %11 = vector.broadcast %cst_8 : f32 to vector<128x128xf32>
      %c0_9 = arith.constant 0 : index
      %c0_10 = arith.constant 0 : index
      %12 = vector.load %arg2[%c0_9, %c0_10] : memref<128x128xf32, #tpu.memory_space<vmem>>, vector<128x128xf32>
      tpu.vector_store %arg2[%c0_9, %c0_10], %11 {strides = array<i32>} : memref<128x128xf32, #tpu.memory_space<vmem>>, vector<128x128xf32>,
    } else {
    }
    %c0 = arith.constant 0 : index
    %c0_1 = arith.constant 0 : index
    %3 = vector.load %arg1[%c0, %c0_1] : memref<128x256xf32, #tpu.memory_space<vmem>>, vector<128x256xf32>
    %c0_2 = arith.constant 0 : index
    %c0_3 = arith.constant 0 : index
    %4 = vector.load %arg2[%c0_2, %c0_3] : memref<128x128xf32, #tpu.memory_space<vmem>>, vector<128x128xf32>
    %cst = arith.constant dense<0.000000e+00> : vector<128x128xf32>
    %5 = tpu.matmul %3, %3, %cst {dimension_numbers = #tpu.dot_dimension_numbers<[1], [1], [0], [0], [0, 0, 1, 0], [], []>} : vector<128x256xf32>, vector<128x256xf32>, vector<128x128xf32> -> vector<128x128xf32>
    %6 = arith.addf %4, %5 : vector<128x128xf32>
    %c0_4 = arith.constant 0 : index
    %c0_5 = arith.constant 0 : index
    %7 = vector.load %arg2[%c0_4, %c0_5] : memref<128x128xf32, #tpu.memory_space<vmem>>, vector<128x128xf32>
    tpu.vector_store %arg2[%c0_4, %c0_5], %6 {strides = array<i32>} : memref<128x128xf32, #tpu.memory_space<vmem>>, vector<128x128xf32>,
    %c0_i32_6 = arith.constant 0 : i32
    %8 = arith.cmpi eq, %arg0, %c0_i32_6 : i32
    %9 = arith.extui %8 : i1 to i32
    %c0_i32_7 = arith.constant 0 : i32
    %10 = arith.cmpi ne, %9, %c0_i32_7 : i32
    scf.if %10 {
      %c0_8 = arith.constant 0 : index
      %c0_9 = arith.constant 0 : index
      %11 = vector.load %arg2[%c0_8, %c0_9] : memref<128x128xf32, #tpu.memory_space<vmem>>, vector<128x128xf32>
      %cst_10 = arith.constant 4.8828125E-4 : f32
      %12 = vector.broadcast %cst_10 : f32 to vector<128x128xf32>
      %13 = arith.mulf %11, %12 : vector<128x128xf32>
      %c0_11 = arith.constant 0 : index
      %c0_12 = arith.constant 0 : index
      %14 = vector.load %arg2[%c0_11, %c0_12] : memref<128x128xf32, #tpu.memory_space<vmem>>, vector<128x128xf32>
      tpu.vector_store %arg2[%c0_11, %c0_12], %13 {strides = array<i32>} : memref<128x128xf32, #tpu.memory_space<vmem>>, vector<128x128xf32>,
    } else {
    }
    return
  }
  func.func @transform_0(%arg0: i32) -> (i32, i32) {
    %c0_i32 = arith.constant 0 : i32
    %c0_i32_0 = arith.constant 0 : i32
    return %c0_i32, %arg0 : i32, i32
  }
  func.func @transform_1(%arg0: i32) -> (i32, i32) {
    %c0_i32 = arith.constant 0 : i32
    %c0_i32_0 = arith.constant 0 : i32
    %c0_i32_1 = arith.constant 0 : i32
    return %c0_i32, %c0_i32_0 : i32, i32
  }
}

</mosaic_0001>

<bundles_post_ra>
// kernel: gram_matrix_padded.1
= control target key start
LH: loop header
LB: loop body
LE: loop exit
PB: predicated region body
PF: predicated region fallthrough
CT: control target
= control target key end

     0   :  { %s572_s0 = inlined_call_operand.vmem [shape: f32[128,256], index: 0, kind: input, shape index: {}]   ;;  %s573_s1 = inlined_call_operand.hbm [shape: f32[128,128], index: 1, kind: output, shape index: {}]  }
   0x1   :  { %v386_v0 = vld [vmem:[%s572_s0 + $0xf0] sm:$0xff]  ;;  %v391_v1 = vld [vmem:[%s572_s0 + $0xf8] sm:$0xff]  ;;  %v398_v2 = vld [vmem:[%s572_s0 + $0xe0] sm:$0xff] }
   0x2   :  { %308 = vmatpush.xpose.msra.mxu2 %v386_v0  ;;  %324 = vmatpush.xpose.msra.mxu3 %v391_v1  ;;  %v403_v3 = vld [vmem:[%s572_s0 + $0xe8] sm:$0xff]  ;;  %v412_v4 = vld [vmem:[%s572_s0 + $0xd0] sm:$0xff]  ;;  %v417_v5 = vld [vmem:[%s572_s0 + $0xd8] sm:$0xff] }
   0x3   :  { %77 = vmatpush.xpose.msra.mxu0 %v386_v0  ;;  %142 = vmatpush.xpose.msra.mxu1 %v391_v1 }
   0x6   :  { %309 = vmatpush.xpose.msra.mxu2 %v398_v2  ;;  %325 = vmatpush.xpose.msra.mxu3 %v403_v3 }
   0x7   :  { %78 = vmatpush.xpose.msra.mxu0 %v398_v2  ;;  %143 = vmatpush.xpose.msra.mxu1 %v403_v3 }
   0x8   :  { %6 = vsyncpa [#allocation3], 0  ;;  %v426_v6 = vld [vmem:[%s572_s0 + $0xc0] sm:$0xff]  ;;  %v431_v7 = vld [vmem:[%s572_s0 + $0xc8] sm:$0xff]  ;;  %s296_s15 = sshll.u32 %s573_s1, 4  ;;  %s371_s16 = smov 128   ;;  %s297_s15 = int_to_ptr.hbm [resolvable:$true] %s296_s15 }
   0x9   :  { %v440_v8 = vld [vmem:[%s572_s0 + $0xb0] sm:$0xff]  ;;  %v445_v9 = vld [vmem:[%s572_s0 + $0xb8] sm:$0xff]  ;;  %v454_v10 = vld [vmem:[%s572_s0 + $0xa0] sm:$0xff]  ;;  %s372_s17 = smov 8  }
   0xa   :  { %310 = vmatpush.xpose.msra.mxu2 %v412_v4  ;;  %326 = vmatpush.xpose.msra.mxu3 %v417_v5  ;;  %v459_v11 = vld [vmem:[%s572_s0 + $0xa8] sm:$0xff]  ;;  %v468_v12 = vld [vmem:[%s572_s0 + $0x90] sm:$0xff]  ;;  %v473_v13 = vld [vmem:[%s572_s0 + $0x98] sm:$0xff] }
   0xb   :  { %79 = vmatpush.xpose.msra.mxu0 %v412_v4  ;;  %144 = vmatpush.xpose.msra.mxu1 %v417_v5  ;;  %v45_v14 = vld [vmem:[%s572_s0 + $0x80] sm:$0xff]  ;;  %v46_v15 = vld [vmem:[%s572_s0 + $0x88] sm:$0xff]  ;;  %v490_v16 = vld [vmem:[%s572_s0 + $0x70] sm:$0xff] }
   0xc   :  { %v495_v17 = vld [vmem:[%s572_s0 + $0x78] sm:$0xff]  ;;  %v502_v18 = vld [vmem:[%s572_s0 + $0x60] sm:$0xff]  ;;  %v507_v19 = vld [vmem:[%s572_s0 + $0x68] sm:$0xff] }
   0xd   :  { %v39_v20 = vld [vmem:[%s572_s0 + $0x50] sm:$0xff]  ;;  %v40_v21 = vld [vmem:[%s572_s0 + $0x58] sm:$0xff]  ;;  %v37_v22 = vld [vmem:[%s572_s0 + $0x40] sm:$0xff] }
   0xe   :  { %311 = vmatpush.xpose.msra.mxu2 %v426_v6  ;;  %327 = vmatpush.xpose.msra.mxu3 %v431_v7  ;;  %v38_v23 = vld [vmem:[%s572_s0 + $0x48] sm:$0xff]  ;;  %v35_v24 = vld [vmem:[%s572_s0 + $0x30] sm:$0xff]  ;;  %v36_v25 = vld [vmem:[%s572_s0 + $0x38] sm:$0xff] }
   0xf   :  { %80 = vmatpush.xpose.msra.mxu0 %v426_v6  ;;  %145 = vmatpush.xpose.msra.mxu1 %v431_v7  ;;  %v33_v26 = vld [vmem:[%s572_s0 + $0x20] sm:$0xff]  ;;  %v34_v27 = vld [vmem:[%s572_s0 + $0x28] sm:$0xff]  ;;  %v31_v28 = vld [vmem:[%s572_s0 + $0x10] sm:$0xff] }
  0x10   :  { %v32_v29 = vld [vmem:[%s572_s0 + $0x18] sm:$0xff]  ;;  %v29_v30 = vld [vmem:[%s572_s0] sm:$0xff]  ;;  %v30_v31 = vld [vmem:[%s572_s0 + $0x8] sm:$0xff]  ;;  %s370_s0 = smov [#allocation2]  }
  0x11   :  { %s294_s12 = sshll.u32 %s370_s0, 4  ;;  %s295_s12 = int_to_ptr.vmem [resolvable:$true] %s294_s12 }
  0x12   :  { %312 = vmatpush.xpose.msra.mxu2 %v440_v8  ;;  %328 = vmatpush.xpose.msra.mxu3 %v445_v9 }
  0x13   :  { %81 = vmatpush.xpose.msra.mxu0 %v440_v8  ;;  %146 = vmatpush.xpose.msra.mxu1 %v445_v9 }
  0x16   :  { %313 = vmatpush.xpose.msra.mxu2 %v454_v10  ;;  %329 = vmatpush.xpose.msra.mxu3 %v459_v11 }
  0x17   :  { %82 = vmatpush.xpose.msra.mxu0 %v454_v10  ;;  %147 = vmatpush.xpose.msra.mxu1 %v459_v11 }
  0x1a   :  { %314 = vmatpush.xpose.msra.mxu2 %v468_v12  ;;  %330 = vmatpush.xpose.msra.mxu3 %v473_v13 }
  0x1b   :  { %83 = vmatpush.xpose.msra.mxu0 %v468_v12  ;;  %148 = vmatpush.xpose.msra.mxu1 %v473_v13 }
  0x1e   :  { %315 = vmatpush.xpose.msra.mxu2 %v45_v14  ;;  %331 = vmatpush.xpose.msra.mxu3 %v46_v15 }
  0x1f   :  { %84 = vmatpush.xpose.msra.mxu0 %v45_v14  ;;  %149 = vmatpush.xpose.msra.mxu1 %v46_v15 }
  0x22   :  { %316 = vmatpush.xpose.msra.mxu2 %v490_v16  ;;  %332 = vmatpush.xpose.msra.mxu3 %v495_v17 }
  0x23   :  { %85 = vmatpush.xpose.msra.mxu0 %v490_v16  ;;  %150 = vmatpush.xpose.msra.mxu1 %v495_v17 }
  0x26   :  { %317 = vmatpush.xpose.msra.mxu2 %v502_v18  ;;  %333 = vmatpush.xpose.msra.mxu3 %v507_v19 }
  0x27   :  { %86 = vmatpush.xpose.msra.mxu0 %v502_v18  ;;  %151 = vmatpush.xpose.msra.mxu1 %v507_v19 }
  0x2a   :  { %318 = vmatpush.xpose.msra.mxu2 %v39_v20  ;;  %334 = vmatpush.xpose.msra.mxu3 %v40_v21 }
  0x2b   :  { %87 = vmatpush.xpose.msra.mxu0 %v39_v20  ;;  %152 = vmatpush.xpose.msra.mxu1 %v40_v21 }
  0x2e   :  { %319 = vmatpush.xpose.msra.mxu2 %v37_v22  ;;  %335 = vmatpush.xpose.msra.mxu3 %v38_v23 }
  0x2f   :  { %88 = vmatpush.xpose.msra.mxu0 %v37_v22  ;;  %153 = vmatpush.xpose.msra.mxu1 %v38_v23 }
  0x32   :  { %320 = vmatpush.xpose.msra.mxu2 %v35_v24  ;;  %336 = vmatpush.xpose.msra.mxu3 %v36_v25 }
  0x33   :  { %89 = vmatpush.xpose.msra.mxu0 %v35_v24  ;;  %154 = vmatpush.xpose.msra.mxu1 %v36_v25 }
  0x36   :  { %321 = vmatpush.xpose.msra.mxu2 %v33_v26  ;;  %337 = vmatpush.xpose.msra.mxu3 %v34_v27 }
  0x37   :  { %90 = vmatpush.xpose.msra.mxu0 %v33_v26  ;;  %155 = vmatpush.xpose.msra.mxu1 %v34_v27 }
  0x3a   :  { %322 = vmatpush.xpose.msra.mxu2 %v31_v28  ;;  %338 = vmatpush.xpose.msra.mxu3 %v32_v29 }
  0x3b   :  { %91 = vmatpush.xpose.msra.mxu0 %v31_v28  ;;  %156 = vmatpush.xpose.msra.mxu1 %v32_v29 }
  0x3e   :  { %323 = vmatpush.xpose.msra.mxu2 %v29_v30  ;;  %339 = vmatpush.xpose.msra.mxu3 %v30_v31 }
  0x3f   :  { %92 = vmatpush.xpose.msra.mxu0 %v29_v30  ;;  %157 = vmatpush.xpose.msra.mxu1 %v30_v31 }
  0x41   :  { %117 = vmatmul.f32.vlgmr.msra.gmra.mxu2 %v45_v14  ;;  %182 = vmatmul.f32.vlgmr.msra.gmra.mxu3 %v46_v15 }
  0x42   :  { %93 = vmatmul.f32.vlgmr.msra.gmra.mxu0 %v29_v30  ;;  %158 = vmatmul.f32.vlgmr.msra.gmra.mxu1 %v30_v31 }
  0x49   :  { %120 = vmatmul.f32.gmra.mxu2 %v468_v12  ;;  %185 = vmatmul.f32.gmra.mxu3 %v473_v13 }
  0x4a   :  { %96 = vmatmul.f32.gmra.mxu0 %v31_v28  ;;  %161 = vmatmul.f32.gmra.mxu1 %v32_v29 }
  0x51   :  { %123 = vmatmul.f32.gmra.mxu2 %v454_v10  ;;  %188 = vmatmul.f32.gmra.mxu3 %v459_v11 }
  0x52   :  { %99 = vmatmul.f32.gmra.mxu0 %v33_v26  ;;  %164 = vmatmul.f32.gmra.mxu1 %v34_v27 }
  0x59   :  { %126 = vmatmul.f32.gmra.mxu2 %v440_v8  ;;  %191 = vmatmul.f32.gmra.mxu3 %v445_v9 }
  0x5a   :  { %102 = vmatmul.f32.gmra.mxu0 %v35_v24  ;;  %167 = vmatmul.f32.gmra.mxu1 %v36_v25 }
  0x61   :  { %129 = vmatmul.f32.gmra.mxu2 %v426_v6  ;;  %194 = vmatmul.f32.gmra.mxu3 %v431_v7 }
  0x62   :  { %105 = vmatmul.f32.gmra.mxu0 %v37_v22  ;;  %170 = vmatmul.f32.gmra.mxu1 %v38_v23 }
  0x69   :  { %132 = vmatmul.f32.gmra.mxu2 %v412_v4  ;;  %197 = vmatmul.f32.gmra.mxu3 %v417_v5 }
  0x6a   :  { %108 = vmatmul.f32.gmra.mxu0 %v39_v20  ;;  %173 = vmatmul.f32.gmra.mxu1 %v40_v21 }
  0x71   :  { %135 = vmatmul.f32.gmra.mxu2 %v398_v2  ;;  %200 = vmatmul.f32.gmra.mxu3 %v403_v3 }
  0x72   :  { %111 = vmatmul.f32.gmra.mxu0 %v502_v18  ;;  %176 = vmatmul.f32.gmra.mxu1 %v507_v19 }
  0x79   :  { %138 = vmatmul.f32.gmra.mxu2 %v386_v0  ;;  %203 = vmatmul.f32.gmra.mxu3 %v391_v1 }
  0x7a   :  { %114 = vmatmul.f32.gmra.mxu0 %v490_v16  ;;  %179 = vmatmul.f32.gmra.mxu1 %v495_v17 }
  0xbf   :  { %v94_v32 = vpop.f32.mrf.mxu0  ;;  %v159_v33 = vpop.f32.mrf.mxu1 }
  0xc0   :  { %v160_v34 = vadd.f32 %v159_v33, %v94_v32 }
  0xc2   :  { %v258_v36 = vmul.f32 0.00048828125, %v160_v34 }
  0xc4   :  { %v118_v35 = vpop.f32.mrf.mxu2  ;;  %v183_v37 = vpop.f32.mrf.mxu3  ;;  %274 = vst [vmem:[#allocation2] sm:$0xff] %v258_v36 }
  0xc5   :  { %v184_v38 = vadd.f32 %v183_v37, %v118_v35 }
  0xc7   :  { %v97_v39 = vpop.f32.mrf.mxu0  ;;  %v162_v40 = vpop.f32.mrf.mxu1  ;;  %v266_v42 = vmul.f32 0.00048828125, %v184_v38 }
  0xc8   :  { %v163_v41 = vadd.f32 %v162_v40, %v97_v39 }
  0xc9   :  { %282 = vst [vmem:[#allocation2 + $0x40] sm:$0xff] %v266_v42 }
  0xca   :  { %v259_v44 = vmul.f32 0.00048828125, %v163_v41 }
  0xcc   :  { %v121_v43 = vpop.f32.mrf.mxu2  ;;  %v186_v45 = vpop.f32.mrf.mxu3  ;;  %275 = vst [vmem:[#allocation2 + $0x8] sm:$0xff] %v259_v44 }
  0xcd   :  { %v187_v46 = vadd.f32 %v186_v45, %v121_v43 }
  0xcf   :  { %v100_v47 = vpop.f32.mrf.mxu0  ;;  %v165_v48 = vpop.f32.mrf.mxu1  ;;  %v267_v50 = vmul.f32 0.00048828125, %v187_v46 }
  0xd0   :  { %v166_v49 = vadd.f32 %v165_v48, %v100_v47 }
  0xd1   :  { %283 = vst [vmem:[#allocation2 + $0x48] sm:$0xff] %v267_v50 }
  0xd2   :  { %v260_v52 = vmul.f32 0.00048828125, %v166_v49 }
  0xd4   :  { %v124_v51 = vpop.f32.mrf.mxu2  ;;  %v189_v53 = vpop.f32.mrf.mxu3  ;;  %276 = vst [vmem:[#allocation2 + $0x10] sm:$0xff] %v260_v52 }
  0xd5   :  { %v190_v54 = vadd.f32 %v189_v53, %v124_v51 }
  0xd7   :  { %v103_v55 = vpop.f32.mrf.mxu0  ;;  %v168_v56 = vpop.f32.mrf.mxu1  ;;  %v268_v58 = vmul.f32 0.00048828125, %v190_v54 }
  0xd8   :  { %v169_v57 = vadd.f32 %v168_v56, %v103_v55 }
  0xd9   :  { %284 = vst [vmem:[#allocation2 + $0x50] sm:$0xff] %v268_v58 }
  0xda   :  { %v261_v60 = vmul.f32 0.00048828125, %v169_v57 }
  0xdc   :  { %v127_v59 = vpop.f32.mrf.mxu2  ;;  %v192_v61 = vpop.f32.mrf.mxu3  ;;  %277 = vst [vmem:[#allocation2 + $0x18] sm:$0xff] %v261_v60 }
  0xdd   :  { %v193_v62 = vadd.f32 %v192_v61, %v127_v59 }
  0xdf   :  { %v106_v63 = vpop.f32.mrf.mxu0  ;;  %v171_v0 = vpop.f32.mrf.mxu1  ;;  %v269_v2 = vmul.f32 0.00048828125, %v193_v62 }
  0xe0   :  { %v172_v1 = vadd.f32 %v171_v0, %v106_v63 }
  0xe1   :  { %285 = vst [vmem:[#allocation2 + $0x58] sm:$0xff] %v269_v2 }
  0xe2   :  { %v262_v4 = vmul.f32 0.00048828125, %v172_v1 }
  0xe4   :  { %v130_v3 = vpop.f32.mrf.mxu2  ;;  %v195_v5 = vpop.f32.mrf.mxu3  ;;  %278 = vst [vmem:[#allocation2 + $0x20] sm:$0xff] %v262_v4 }
  0xe5   :  { %v196_v6 = vadd.f32 %v195_v5, %v130_v3 }
  0xe7   :  { %v109_v7 = vpop.f32.mrf.mxu0  ;;  %v174_v8 = vpop.f32.mrf.mxu1  ;;  %v270_v10 = vmul.f32 0.00048828125, %v196_v6 }
  0xe8   :  { %v175_v9 = vadd.f32 %v174_v8, %v109_v7 }
  0xe9   :  { %286 = vst [vmem:[#allocation2 + $0x60] sm:$0xff] %v270_v10 }
  0xea   :  { %v263_v12 = vmul.f32 0.00048828125, %v175_v9 }
  0xec   :  { %v133_v11 = vpop.f32.mrf.mxu2  ;;  %v198_v13 = vpop.f32.mrf.mxu3  ;;  %279 = vst [vmem:[#allocation2 + $0x28] sm:$0xff] %v263_v12 }
  0xed   :  { %v199_v14 = vadd.f32 %v198_v13, %v133_v11 }
  0xef   :  { %v112_v15 = vpop.f32.mrf.mxu0  ;;  %v177_v16 = vpop.f32.mrf.mxu1  ;;  %v271_v18 = vmul.f32 0.00048828125, %v199_v14 }
  0xf0   :  { %v178_v17 = vadd.f32 %v177_v16, %v112_v15 }
  0xf1   :  { %287 = vst [vmem:[#allocation2 + $0x68] sm:$0xff] %v271_v18 }
  0xf2   :  { %v264_v20 = vmul.f32 0.00048828125, %v178_v17 }
  0xf4   :  { %v136_v19 = vpop.f32.mrf.mxu2  ;;  %v201_v21 = vpop.f32.mrf.mxu3  ;;  %280 = vst [vmem:[#allocation2 + $0x30] sm:$0xff] %v264_v20 }
  0xf5   :  { %v202_v22 = vadd.f32 %v201_v21, %v136_v19 }
  0xf7   :  { %v115_v23 = vpop.f32.mrf.mxu0  ;;  %v180_v24 = vpop.f32.mrf.mxu1  ;;  %v272_v26 = vmul.f32 0.00048828125, %v202_v22 }
  0xf8   :  { %v181_v25 = vadd.f32 %v180_v24, %v115_v23 }
  0xf9   :  { %288 = vst [vmem:[#allocation2 + $0x70] sm:$0xff] %v272_v26 }
  0xfa   :  { %v265_v28 = vmul.f32 0.00048828125, %v181_v25 }
  0xfc   :  { %v139_v27 = vpop.f32.mrf.mxu2  ;;  %v204_v29 = vpop.f32.mrf.mxu3  ;;  %281 = vst [vmem:[#allocation2 + $0x38] sm:$0xff] %v265_v28 }
  0xfd   :  { %v205_v30 = vadd.f32 %v204_v29, %v139_v27 }
  0xff   :  { %v273_v31 = vmul.f32 0.00048828125, %v205_v30 }
 0x101   :  { %289 = vst [vmem:[#allocation2 + $0x78] sm:$0xff] %v273_v31 }
 0x102   :  { %302 = dma.vmem_to_hbm [thread:$0]  %s295_s12, 2048, %s297_s15, [#allocation3], %s371_s16, %s371_s16, %s372_s17  }
 0x103   :  { %368 = dma.done.wait [#allocation3], 2048  }
 0x104   :  { %369 = vsyncadd [#allocation3], 4294965248 }
 0x105   :  { %307 = vsyncpa [#allocation3], 1 }

</bundles_post_ra>
